<compile_context>
chip_gen: v7x
topology: tpu7x:2x2x1
jax: 0.10.0
libtpu: 0.0.40
codegen_flags: <defaults>
</compile_context>

<pallas_src>
import functools
import numpy as np
import jax
import jax.numpy as jnp
from jax.experimental import pallas as pl
from jax.experimental.pallas import tpu as pltpu

# ----------------- configuration (consistent with Freq.__init__ / forward) ----
B           = 2
INPUT_LEN   = 8            # L  (seq_len)
OUTPUT_LEN  = 8            # pred_len; == L so the in-forward `.resize` is a pure reshape
NUM_NODES   = 4            # N
INPUT_DIM   = 3            # C
CUT_FREQ    = 3            # dominance_freq  (<= L//2+1, and 2*cut_freq < (L+P)/2+2)
NODE_DIM    = 10
EMBED_DIM   = 32
NUM_LAYER   = 2
IF_NODE     = True
IF_TID      = False        # temporal-embedding branches disabled so the concat width
IF_DIW      = False        # equals hidden_dim (required for the module to run at all)
HIDDEN_DIM  = EMBED_DIM + NODE_DIM        # = 42 -> regression in_channels = 42-21 = 21
HALF        = HIDDEN_DIM // 2             # 21
BN          = B * NUM_NODES               # rows processed per kernel invocation
LC          = INPUT_LEN * INPUT_DIM       # time_series_emb_layer in_channels (cols (t,c))
PC          = OUTPUT_LEN * INPUT_DIM      # output-length * channels
LENGTH_RATIO = (INPUT_LEN + OUTPUT_LEN) / INPUT_LEN
F_OUT       = int(CUT_FREQ * LENGTH_RATIO)                 # freq_upsampler out features
F_FULL      = int((INPUT_LEN + OUTPUT_LEN) / 2 + 2)        # padded half-spectrum length
N_IRFFT     = 2 * (F_FULL - 1)                             # torch.fft.irfft default n
OUT_PAD     = 128                                          # lane-dense output width

assert OUTPUT_LEN == INPUT_LEN            # the in-forward `.resize(B, L, N, C)` requires it
assert F_OUT < F_FULL and F_OUT <= N_IRFFT // 2            # no Nyquist bin -> doubling valid
assert CUT_FREQ <= INPUT_LEN // 2 + 1
assert HIDDEN_DIM - 21 == HALF            # regression_layer in_channels must equal HALF


# ----------------- DFT matrices (trace-time constants) ------------------------
def _build_dft_mats():
    # rfft (first CUT_FREQ bins) as real matrices: X = cr @ x + i * (ci @ x)
    t = np.arange(INPUT_LEN)
    k = np.arange(CUT_FREQ)
    ang = 2.0 * np.pi * np.outer(k, t) / INPUT_LEN
    cr = np.cos(ang)                       # [F, L]
    ci = -np.sin(ang)                      # [F, L]
    # irfft of an N_IRFFT-point half-spectrum whose first F_OUT bins are nonzero,
    # evaluated only at the last OUTPUT_LEN samples.
    m = np.arange(F_OUT)
    tt = np.arange(N_IRFFT - OUTPUT_LEN, N_IRFFT)
    ang2 = 2.0 * np.pi * np.outer(tt, m) / N_IRFFT          # [P, F_out]
    w_r = np.where(m == 0, 1.0, 2.0)                        # Hermitian doubling (no Nyquist)
    w_i = np.where(m == 0, 0.0, 2.0)                        # DC imaginary part discarded
    icr = (w_r[None, :] * np.cos(ang2)) / N_IRFFT           # [P, F_out]
    ici = (-w_i[None, :] * np.sin(ang2)) / N_IRFFT          # [P, F_out]
    return cr, ci, icr, ici


# ----------------- fused kernel ------------------------------------------------
# Row layout everywhere: rows = (b, n), columns = (t, c) for the time-series part,
# (feature) for the STID part.  All 1x1 Conv2d layers are [rows, feat] @ [feat, out].
#
# TODO(synk): `MultiLayerPerceptron` is not defined in the provided source; the
# standard STID residual block (Conv1x1 -> ReLU -> Dropout(eval=identity) ->
# Conv1x1 + residual) is used here.
def fused_kernel(x_ref, m_ref, e_ref, a_ref, bb_ref, wts_ref, node_ref,
                 w1_ref, b1_ref, w2_ref, b2_ref, phi_ref, eps_ref,
                 wmu_ref, wreg_ref, breg_ref, o_ref, *, num_layer, seq_len):
    f32 = jnp.float32
    x = x_ref[...]                                                        # [BN, L*C]

    # --- per-(b, n, c) normalization statistics over time ---
    means = jnp.dot(x, m_ref[...], preferred_element_type=f32)            # [BN, C]
    mean_b = jnp.dot(means, e_ref[...], preferred_element_type=f32)       # [BN, L*C]
    xc = x - mean_b
    var = (jnp.dot(xc * xc, m_ref[...], preferred_element_type=f32)
           * (seq_len / (seq_len - 1.0)) + 1e-5)                          # unbiased var
    std = jnp.sqrt(var)                                                   # [BN, C]

    # --- folded rfft -> complex Linear -> irfft -> *ratio -> de-normalize ---
    # The 1/std normalization cancels against the *std de-normalization in the
    # linear (data) part; only the upsampler-bias term keeps the std factor.
    feat = (jnp.dot(xc, a_ref[...], preferred_element_type=f32)           # [BN, P*C]
            + jnp.dot(std, bb_ref[...], preferred_element_type=f32)
            + mean_b)

    # --- STID: time-series embedding + node embedding (bias folded into node_ref) ---
    h = jnp.dot(feat, wts_ref[...], preferred_element_type=f32) + node_ref[...]  # [BN, HID]

    # --- residual MLP encoder ---
    for l in range(num_layer):
        a = jnp.maximum(
            jnp.dot(h, w1_ref[l], preferred_element_type=f32) + b1_ref[l], 0.0)
        h = jnp.dot(a, w2_ref[l], preferred_element_type=f32) + b2_ref[l] + h

    # --- VIB head: mu path folded into wmu_ref; std path via upper-half selector ---
    z = jnp.dot(h, phi_ref[...], preferred_element_type=f32) - 5.0        # [BN, HALF]
    stdv = jnp.where(z > 20.0, z, jnp.log(1.0 + jnp.exp(jnp.minimum(z, 20.0))))  # softplus
    o_ref[...] = (jnp.dot(h, wmu_ref[...], preferred_element_type=f32)
                  + jnp.dot(eps_ref[...] * stdv, wreg_ref[...], preferred_element_type=f32)
                  + breg_ref[...])                                        # [BN, 128] lane-dense


# ----------------- pallas_call wrapper (single grid point, whole batch) -------
_fused_call = pl.pallas_call(
    functools.partial(fused_kernel, num_layer=NUM_LAYER, seq_len=INPUT_LEN),
    out_shape=jax.ShapeDtypeStruct((BN, OUT_PAD), jnp.float32),
    grid=(1,),
    in_specs=[
        pl.BlockSpec((BN, LC), lambda i: (0, 0)),                          # x rows=(b,n)
        pl.BlockSpec((LC, INPUT_DIM), lambda i: (0, 0)),                   # mean matrix
        pl.BlockSpec((INPUT_DIM, LC), lambda i: (0, 0)),                   # channel broadcast
        pl.BlockSpec((LC, PC), lambda i: (0, 0)),                          # folded DFT chain
        pl.BlockSpec((INPUT_DIM, PC), lambda i: (0, 0)),                   # folded bias*std
        pl.BlockSpec((PC, HIDDEN_DIM), lambda i: (0, 0)),                  # wtsT (padded)
        pl.BlockSpec((BN, HIDDEN_DIM), lambda i: (0, 0)),                  # node_emb+bts (tiled)
        pl.BlockSpec((NUM_LAYER, HIDDEN_DIM, HIDDEN_DIM), lambda i: (0, 0, 0)),  # W1^T stack
        pl.BlockSpec((NUM_LAYER, 1, HIDDEN_DIM), lambda i: (0, 0, 0)),           # b1 stack
        pl.BlockSpec((NUM_LAYER, HIDDEN_DIM, HIDDEN_DIM), lambda i: (0, 0, 0)),  # W2^T stack
        pl.BlockSpec((NUM_LAYER, 1, HIDDEN_DIM), lambda i: (0, 0, 0)),           # b2 stack
        pl.BlockSpec((HIDDEN_DIM, HALF), lambda i: (0, 0)),                # upper-half selector
        pl.BlockSpec((BN, HALF), lambda i: (0, 0)),                        # eps
        pl.BlockSpec((HIDDEN_DIM, OUT_PAD), lambda i: (0, 0)),             # mu-path @ Wreg (pad)
        pl.BlockSpec((HALF, OUT_PAD), lambda i: (0, 0)),                   # Wreg^T (pad)
        pl.BlockSpec((1, OUT_PAD), lambda i: (0, 0)),                      # breg (pad)
    ],
    out_specs=pl.BlockSpec((BN, OUT_PAD), lambda i: (0, 0)),
    compiler_params=pltpu.CompilerParams(dimension_semantics=("arbitrary",)),
)


# ----------------- deterministic parameter construction (+ constant folding) --
def make_params(key):
    ks = jax.random.split(key, 8)

    def linear(k, out_f, in_f):
        bound = 1.0 / np.sqrt(in_f)
        kw, kb = jax.random.split(k)
        w = jax.random.uniform(kw, (out_f, in_f), jnp.float32, -bound, bound)
        b = jax.random.uniform(kb, (out_f,), jnp.float32, -bound, bound)
        return w, b

    # freq_upsampler: nn.Linear(F, F_OUT).to(cfloat) -> real weights, zero imaginary
    wr, br = linear(ks[0], F_OUT, CUT_FREQ)
    wi = jnp.zeros_like(wr)
    bi = jnp.zeros_like(br)

    # constant-fold rfft -> complex Linear -> zero-pad -> irfft (last P rows) -> *ratio
    cr, ci, icr, ici = _build_dft_mats()
    cr = jnp.asarray(cr, jnp.float32);  ci = jnp.asarray(ci, jnp.float32)
    icr = jnp.asarray(icr, jnp.float32); ici = jnp.asarray(ici, jnp.float32)
    A = (icr @ wr + ici @ wi) @ cr + (ici @ wr - icr @ wi) @ ci           # [P, L]
    bias_f = icr @ br + ici @ bi                                          # [P]
    eye_c = jnp.eye(INPUT_DIM, dtype=jnp.float32)
    # rows=(b,n), cols=(t,c) layout: the DFT chain is block-diagonal over channels.
    a_fold = LENGTH_RATIO * jnp.kron(A.T, eye_c)                          # [L*C, P*C]
    b_bias = LENGTH_RATIO * jnp.kron(bias_f[None, :], eye_c)              # [C, P*C]
    m_mean = jnp.kron(jnp.ones((INPUT_LEN, 1), jnp.float32) / INPUT_LEN, eye_c)   # [L*C, C]
    e_bcast = jnp.kron(jnp.ones((1, INPUT_LEN), jnp.float32), eye_c)              # [C, L*C]

    # node embedding (xavier_uniform)
    xav = np.sqrt(6.0 / (NUM_NODES + NODE_DIM))
    node_emb = jax.random.uniform(ks[1], (NUM_NODES, NODE_DIM), jnp.float32, -xav, xav)

    # time_series_emb_layer: Conv2d(L*C, EMBED, 1x1)
    wts, bts = linear(ks[2], EMBED_DIM, LC)

    # encoder: NUM_LAYER residual MLP blocks (two 1x1 convs each)
    w1s, b1s, w2s, b2s = [], [], [], []
    for l in range(NUM_LAYER):
        w1, b1 = linear(jax.random.fold_in(ks[3], 2 * l), HIDDEN_DIM, HIDDEN_DIM)
        w2, b2 = linear(jax.random.fold_in(ks[3], 2 * l + 1), HIDDEN_DIM, HIDDEN_DIM)
        w1s.append(w1.T); b1s.append(b1[None, :])
        w2s.append(w2.T); b2s.append(b2[None, :])

    # regression_layer: Conv2d(HALF, OUTPUT_LEN, 1x1)
    wreg, breg = linear(ks[4], OUTPUT_LEN, HALF)

    # concat([ts_emb, node_emb]) as padded matmul + (node_emb + conv bias), tiled over batch
    wts_pad = jnp.zeros((LC, HIDDEN_DIM), jnp.float32).at[:, :EMBED_DIM].set(wts.T)
    node_plus = (jnp.zeros((NUM_NODES, HIDDEN_DIM), jnp.float32)
                 .at[:, EMBED_DIM:].set(node_emb)
                 .at[:, :EMBED_DIM].add(jnp.broadcast_to(bts, (NUM_NODES, EMBED_DIM))))
    node_full = jnp.tile(node_plus, (B, 1))                               # [B*N, HIDDEN]

    # VIB head: keep only the upper-half (softplus) selector; fold the mu-half selector
    # into the regression weight.  Regression weight/bias zero-padded to 128 lanes so
    # the kernel's single HBM store is lane-dense.
    p_hi = jnp.eye(HIDDEN_DIM, dtype=jnp.float32)[:, HALF:]               # [HIDDEN, HALF]
    wregT_pad = jnp.zeros((HALF, OUT_PAD), jnp.float32).at[:, :OUTPUT_LEN].set(wreg.T)
    wmu_reg = jnp.zeros((HIDDEN_DIM, OUT_PAD), jnp.float32).at[:HALF, :OUTPUT_LEN].set(wreg.T)
    breg_pad = jnp.zeros((1, OUT_PAD), jnp.float32).at[0, :OUTPUT_LEN].set(breg)

    return dict(
        m_mean=m_mean, e_bcast=e_bcast, a_fold=a_fold, b_bias=b_bias,
        wts=wts_pad, node=node_full,
        w1T=jnp.stack(w1s), b1=jnp.stack(b1s),
        w2T=jnp.stack(w2s), b2=jnp.stack(b2s),
        p_hi=p_hi, wmu_reg=wmu_reg, wregT=wregT_pad, breg=breg_pad,
    )


# ----------------- full forward (only tiny layout glue in plain JAX) ----------
def freq_forward(history_data, future_data, params, eps):
    del future_data  # unused by the PyTorch forward as well
    b, l, n, c = history_data.shape
    # [B, L, N, C] -> rows=(b, n), cols=(t, c): the one input transpose (tiny, one-shot)
    x_bn = jnp.transpose(history_data, (0, 2, 1, 3)).reshape(b * n, l * c)

    out_pad = _fused_call(
        x_bn, params["m_mean"], params["e_bcast"], params["a_fold"], params["b_bias"],
        params["wts"], params["node"], params["w1T"], params["b1"],
        params["w2T"], params["b2"], params["p_hi"], eps,
        params["wmu_reg"], params["wregT"], params["breg"])               # [B*N, 128]

    prediction = (out_pad[:, :OUTPUT_LEN]
                  .reshape(b, n, OUTPUT_LEN)
                  .transpose(0, 2, 1)[..., None])                         # [B, P, N, 1]
    mu = jnp.mean(prediction)
    std = jnp.exp(prediction)
    return (mu, std), prediction


# ----------------- main --------------------------------------------------------
if __name__ == "__main__":
    key = jax.random.PRNGKey(0)
    k_hist, k_param, k_eps = jax.random.split(key, 3)

    history_data = jax.random.uniform(k_hist, (B, INPUT_LEN, NUM_NODES, INPUT_DIM),
                                      jnp.float32, 0.0, 1.0)
    future_data = jnp.zeros_like(history_data)
    params = make_params(k_param)
    eps = jax.random.normal(k_eps, (BN, HALF), jnp.float32)               # reparametrize noise

    (mu, std), prediction = jax.jit(freq_forward)(history_data, future_data, params, eps)
    jax.block_until_ready((mu, std, prediction))

    assert prediction.shape == (B, OUTPUT_LEN, NUM_NODES, 1)
    assert std.shape == prediction.shape and mu.shape == ()
    assert bool(jnp.all(jnp.isfinite(prediction)))
    print("KERNEL_OK")
</pallas_src>

<mosaic_0001>
module attributes {stable_mosaic.version = 11 : i64} {
  func.func @fused_kernel(%arg0: i32, %arg1: memref<8x24xf32, #tpu.memory_space<vmem>>, %arg2: memref<24x3xf32, #tpu.memory_space<vmem>>, %arg3: memref<3x24xf32, #tpu.memory_space<vmem>>, %arg4: memref<24x24xf32, #tpu.memory_space<vmem>>, %arg5: memref<3x24xf32, #tpu.memory_space<vmem>>, %arg6: memref<24x42xf32, #tpu.memory_space<vmem>>, %arg7: memref<8x42xf32, #tpu.memory_space<vmem>>, %arg8: memref<2x42x42xf32, #tpu.memory_space<vmem>>, %arg9: memref<2x1x42xf32, #tpu.memory_space<vmem>>, %arg10: memref<2x42x42xf32, #tpu.memory_space<vmem>>, %arg11: memref<2x1x42xf32, #tpu.memory_space<vmem>>, %arg12: memref<42x21xf32, #tpu.memory_space<vmem>>, %arg13: memref<8x21xf32, #tpu.memory_space<vmem>>, %arg14: memref<42x128xf32, #tpu.memory_space<vmem>>, %arg15: memref<21x128xf32, #tpu.memory_space<vmem>>, %arg16: memref<1x128xf32, #tpu.memory_space<vmem>>, %arg17: memref<8x128xf32, #tpu.memory_space<vmem>>) attributes {dimension_semantics = [#tpu.dimension_semantics<arbitrary>], iteration_bounds = array<i64: 1>, scalar_prefetch = 0 : i64, scratch_operands = 0 : i64, tpu.core_type = #tpu.core_type<tc>, window_params = [{pipeline_mode = #tpu.pipeline_mode<synchronous>, transform_indices = @transform_0, window_bounds = array<i64: 8, 24>}, {pipeline_mode = #tpu.pipeline_mode<synchronous>, transform_indices = @transform_1, window_bounds = array<i64: 24, 3>}, {pipeline_mode = #tpu.pipeline_mode<synchronous>, transform_indices = @transform_2, window_bounds = array<i64: 3, 24>}, {pipeline_mode = #tpu.pipeline_mode<synchronous>, transform_indices = @transform_3, window_bounds = array<i64: 24, 24>}, {pipeline_mode = #tpu.pipeline_mode<synchronous>, transform_indices = @transform_4, window_bounds = array<i64: 3, 24>}, {pipeline_mode = #tpu.pipeline_mode<synchronous>, transform_indices = @transform_5, window_bounds = array<i64: 24, 42>}, {pipeline_mode = #tpu.pipeline_mode<synchronous>, transform_indices = @transform_6, window_bounds = array<i64: 8, 42>}, {pipeline_mode = #tpu.pipeline_mode<synchronous>, transform_indices = @transform_7, window_bounds = array<i64: 2, 42, 42>}, {pipeline_mode = #tpu.pipeline_mode<synchronous>, transform_indices = @transform_8, window_bounds = array<i64: 2, 1, 42>}, {pipeline_mode = #tpu.pipeline_mode<synchronous>, transform_indices = @transform_9, window_bounds = array<i64: 2, 42, 42>}, {pipeline_mode = #tpu.pipeline_mode<synchronous>, transform_indices = @transform_10, window_bounds = array<i64: 2, 1, 42>}, {pipeline_mode = #tpu.pipeline_mode<synchronous>, transform_indices = @transform_11, window_bounds = array<i64: 42, 21>}, {pipeline_mode = #tpu.pipeline_mode<synchronous>, transform_indices = @transform_12, window_bounds = array<i64: 8, 21>}, {pipeline_mode = #tpu.pipeline_mode<synchronous>, transform_indices = @transform_13, window_bounds = array<i64: 42, 128>}, {pipeline_mode = #tpu.pipeline_mode<synchronous>, transform_indices = @transform_14, window_bounds = array<i64: 21, 128>}, {pipeline_mode = #tpu.pipeline_mode<synchronous>, transform_indices = @transform_15, window_bounds = array<i64: 1, 128>}, {pipeline_mode = #tpu.pipeline_mode<synchronous>, transform_indices = @transform_16, window_bounds = array<i64: 8, 128>}]} {
    %c0 = arith.constant 0 : index
    %c0_0 = arith.constant 0 : index
    %0 = vector.load %arg1[%c0, %c0_0] : memref<8x24xf32, #tpu.memory_space<vmem>>, vector<8x24xf32>
    %c0_1 = arith.constant 0 : index
    %c0_2 = arith.constant 0 : index
    %1 = vector.load %arg2[%c0_1, %c0_2] : memref<24x3xf32, #tpu.memory_space<vmem>>, vector<24x3xf32>
    %cst = arith.constant dense<0.000000e+00> : vector<8x3xf32>
    %2 = tpu.matmul %0, %1, %cst {dimension_numbers = #tpu.dot_dimension_numbers<[1], [0], [0], [1], [0, 0, 1, 1], [], []>} : vector<8x24xf32>, vector<24x3xf32>, vector<8x3xf32> -> vector<8x3xf32>
    %c0_3 = arith.constant 0 : index
    %c0_4 = arith.constant 0 : index
    %3 = vector.load %arg3[%c0_3, %c0_4] : memref<3x24xf32, #tpu.memory_space<vmem>>, vector<3x24xf32>
    %cst_5 = arith.constant dense<0.000000e+00> : vector<8x24xf32>
    %4 = tpu.matmul %2, %3, %cst_5 {dimension_numbers = #tpu.dot_dimension_numbers<[1], [0], [0], [1], [0, 0, 1, 1], [], []>} : vector<8x3xf32>, vector<3x24xf32>, vector<8x24xf32> -> vector<8x24xf32>
    %5 = arith.subf %0, %4 : vector<8x24xf32>
    %6 = arith.mulf %5, %5 : vector<8x24xf32>
    %c0_6 = arith.constant 0 : index
    %c0_7 = arith.constant 0 : index
    %7 = vector.load %arg2[%c0_6, %c0_7] : memref<24x3xf32, #tpu.memory_space<vmem>>, vector<24x3xf32>
    %cst_8 = arith.constant dense<0.000000e+00> : vector<8x3xf32>
    %8 = tpu.matmul %6, %7, %cst_8 {dimension_numbers = #tpu.dot_dimension_numbers<[1], [0], [0], [1], [0, 0, 1, 1], [], []>} : vector<8x24xf32>, vector<24x3xf32>, vector<8x3xf32> -> vector<8x3xf32>
    %cst_9 = arith.constant 1.14285719 : f32
    %9 = vector.broadcast %cst_9 : f32 to vector<8x3xf32>
    %10 = arith.mulf %8, %9 : vector<8x3xf32>
    %cst_10 = arith.constant 9.99999974E-6 : f32
    %11 = vector.broadcast %cst_10 : f32 to vector<8x3xf32>
    %12 = arith.addf %10, %11 : vector<8x3xf32>
    %13 = math.sqrt %12 : vector<8x3xf32>
    %c0_11 = arith.constant 0 : index
    %c0_12 = arith.constant 0 : index
    %14 = vector.load %arg4[%c0_11, %c0_12] : memref<24x24xf32, #tpu.memory_space<vmem>>, vector<24x24xf32>
    %cst_13 = arith.constant dense<0.000000e+00> : vector<8x24xf32>
    %15 = tpu.matmul %5, %14, %cst_13 {dimension_numbers = #tpu.dot_dimension_numbers<[1], [0], [0], [1], [0, 0, 1, 1], [], []>} : vector<8x24xf32>, vector<24x24xf32>, vector<8x24xf32> -> vector<8x24xf32>
    %c0_14 = arith.constant 0 : index
    %c0_15 = arith.constant 0 : index
    %16 = vector.load %arg5[%c0_14, %c0_15] : memref<3x24xf32, #tpu.memory_space<vmem>>, vector<3x24xf32>
    %cst_16 = arith.constant dense<0.000000e+00> : vector<8x24xf32>
    %17 = tpu.matmul %13, %16, %cst_16 {dimension_numbers = #tpu.dot_dimension_numbers<[1], [0], [0], [1], [0, 0, 1, 1], [], []>} : vector<8x3xf32>, vector<3x24xf32>, vector<8x24xf32> -> vector<8x24xf32>
    %18 = arith.addf %15, %17 : vector<8x24xf32>
    %19 = arith.addf %18, %4 : vector<8x24xf32>
    %c0_17 = arith.constant 0 : index
    %c0_18 = arith.constant 0 : index
    %20 = vector.load %arg6[%c0_17, %c0_18] : memref<24x42xf32, #tpu.memory_space<vmem>>, vector<24x42xf32>
    %cst_19 = arith.constant dense<0.000000e+00> : vector<8x42xf32>
    %21 = tpu.matmul %19, %20, %cst_19 {dimension_numbers = #tpu.dot_dimension_numbers<[1], [0], [0], [1], [0, 0, 1, 1], [], []>} : vector<8x24xf32>, vector<24x42xf32>, vector<8x42xf32> -> vector<8x42xf32>
    %c0_20 = arith.constant 0 : index
    %c0_21 = arith.constant 0 : index
    %22 = vector.load %arg7[%c0_20, %c0_21] : memref<8x42xf32, #tpu.memory_space<vmem>>, vector<8x42xf32>
    %23 = arith.addf %21, %22 : vector<8x42xf32>
    %c0_22 = arith.constant 0 : index
    %c0_23 = arith.constant 0 : index
    %c0_24 = arith.constant 0 : index
    %24 = vector.load %arg8[%c0_22, %c0_23, %c0_24] : memref<2x42x42xf32, #tpu.memory_space<vmem>>, vector<1x42x42xf32>
    %25 = vector.shape_cast %24 : vector<1x42x42xf32> to vector<42x42xf32>
    %cst_25 = arith.constant dense<0.000000e+00> : vector<8x42xf32>
    %26 = tpu.matmul %23, %25, %cst_25 {dimension_numbers = #tpu.dot_dimension_numbers<[1], [0], [0], [1], [0, 0, 1, 1], [], []>} : vector<8x42xf32>, vector<42x42xf32>, vector<8x42xf32> -> vector<8x42xf32>
    %c0_26 = arith.constant 0 : index
    %c0_27 = arith.constant 0 : index
    %c0_28 = arith.constant 0 : index
    %27 = vector.load %arg9[%c0_26, %c0_27, %c0_28] : memref<2x1x42xf32, #tpu.memory_space<vmem>>, vector<1x1x42xf32>
    %28 = vector.shape_cast %27 : vector<1x1x42xf32> to vector<1x42xf32>
    %29 = vector.broadcast %28 : vector<1x42xf32> to vector<8x42xf32>
    %30 = arith.addf %26, %29 : vector<8x42xf32>
    %cst_29 = arith.constant 0.000000e+00 : f32
    %31 = vector.broadcast %cst_29 : f32 to vector<8x42xf32>
    %32 = arith.maximumf %30, %31 : vector<8x42xf32>
    %c0_30 = arith.constant 0 : index
    %c0_31 = arith.constant 0 : index
    %c0_32 = arith.constant 0 : index
    %33 = vector.load %arg10[%c0_30, %c0_31, %c0_32] : memref<2x42x42xf32, #tpu.memory_space<vmem>>, vector<1x42x42xf32>
    %34 = vector.shape_cast %33 : vector<1x42x42xf32> to vector<42x42xf32>
    %cst_33 = arith.constant dense<0.000000e+00> : vector<8x42xf32>
    %35 = tpu.matmul %32, %34, %cst_33 {dimension_numbers = #tpu.dot_dimension_numbers<[1], [0], [0], [1], [0, 0, 1, 1], [], []>} : vector<8x42xf32>, vector<42x42xf32>, vector<8x42xf32> -> vector<8x42xf32>
    %c0_34 = arith.constant 0 : index
    %c0_35 = arith.constant 0 : index
    %c0_36 = arith.constant 0 : index
    %36 = vector.load %arg11[%c0_34, %c0_35, %c0_36] : memref<2x1x42xf32, #tpu.memory_space<vmem>>, vector<1x1x42xf32>
    %37 = vector.shape_cast %36 : vector<1x1x42xf32> to vector<1x42xf32>
    %38 = vector.broadcast %37 : vector<1x42xf32> to vector<8x42xf32>
    %39 = arith.addf %35, %38 : vector<8x42xf32>
    %40 = arith.addf %39, %23 : vector<8x42xf32>
    %c1 = arith.constant 1 : index
    %c0_37 = arith.constant 0 : index
    %c0_38 = arith.constant 0 : index
    %41 = vector.load %arg8[%c1, %c0_37, %c0_38] : memref<2x42x42xf32, #tpu.memory_space<vmem>>, vector<1x42x42xf32>
    %42 = vector.shape_cast %41 : vector<1x42x42xf32> to vector<42x42xf32>
    %cst_39 = arith.constant dense<0.000000e+00> : vector<8x42xf32>
    %43 = tpu.matmul %40, %42, %cst_39 {dimension_numbers = #tpu.dot_dimension_numbers<[1], [0], [0], [1], [0, 0, 1, 1], [], []>} : vector<8x42xf32>, vector<42x42xf32>, vector<8x42xf32> -> vector<8x42xf32>
    %c1_40 = arith.constant 1 : index
    %c0_41 = arith.constant 0 : index
    %c0_42 = arith.constant 0 : index
    %44 = vector.load %arg9[%c1_40, %c0_41, %c0_42] : memref<2x1x42xf32, #tpu.memory_space<vmem>>, vector<1x1x42xf32>
    %45 = vector.shape_cast %44 : vector<1x1x42xf32> to vector<1x42xf32>
    %46 = vector.broadcast %45 : vector<1x42xf32> to vector<8x42xf32>
    %47 = arith.addf %43, %46 : vector<8x42xf32>
    %cst_43 = arith.constant 0.000000e+00 : f32
    %48 = vector.broadcast %cst_43 : f32 to vector<8x42xf32>
    %49 = arith.maximumf %47, %48 : vector<8x42xf32>
    %c1_44 = arith.constant 1 : index
    %c0_45 = arith.constant 0 : index
    %c0_46 = arith.constant 0 : index
    %50 = vector.load %arg10[%c1_44, %c0_45, %c0_46] : memref<2x42x42xf32, #tpu.memory_space<vmem>>, vector<1x42x42xf32>
    %51 = vector.shape_cast %50 : vector<1x42x42xf32> to vector<42x42xf32>
    %cst_47 = arith.constant dense<0.000000e+00> : vector<8x42xf32>
    %52 = tpu.matmul %49, %51, %cst_47 {dimension_numbers = #tpu.dot_dimension_numbers<[1], [0], [0], [1], [0, 0, 1, 1], [], []>} : vector<8x42xf32>, vector<42x42xf32>, vector<8x42xf32> -> vector<8x42xf32>
    %c1_48 = arith.constant 1 : index
    %c0_49 = arith.constant 0 : index
    %c0_50 = arith.constant 0 : index
    %53 = vector.load %arg11[%c1_48, %c0_49, %c0_50] : memref<2x1x42xf32, #tpu.memory_space<vmem>>, vector<1x1x42xf32>
    %54 = vector.shape_cast %53 : vector<1x1x42xf32> to vector<1x42xf32>
    %55 = vector.broadcast %54 : vector<1x42xf32> to vector<8x42xf32>
    %56 = arith.addf %52, %55 : vector<8x42xf32>
    %57 = arith.addf %56, %40 : vector<8x42xf32>
    %c0_51 = arith.constant 0 : index
    %c0_52 = arith.constant 0 : index
    %58 = vector.load %arg12[%c0_51, %c0_52] : memref<42x21xf32, #tpu.memory_space<vmem>>, vector<42x21xf32>
    %cst_53 = arith.constant dense<0.000000e+00> : vector<8x21xf32>
    %59 = tpu.matmul %57, %58, %cst_53 {dimension_numbers = #tpu.dot_dimension_numbers<[1], [0], [0], [1], [0, 0, 1, 1], [], []>} : vector<8x42xf32>, vector<42x21xf32>, vector<8x21xf32> -> vector<8x21xf32>
    %cst_54 = arith.constant 5.000000e+00 : f32
    %60 = vector.broadcast %cst_54 : f32 to vector<8x21xf32>
    %61 = arith.subf %59, %60 : vector<8x21xf32>
    %cst_55 = arith.constant 2.000000e+01 : f32
    %62 = vector.broadcast %cst_55 : f32 to vector<8x21xf32>
    %63 = arith.cmpf ogt, %61, %62 : vector<8x21xf32>
    %cst_56 = arith.constant 2.000000e+01 : f32
    %64 = vector.broadcast %cst_56 : f32 to vector<8x21xf32>
    %65 = arith.minimumf %61, %64 : vector<8x21xf32>
    %66 = math.exp %65 : vector<8x21xf32>
    %cst_57 = arith.constant 1.000000e+00 : f32
    %67 = vector.broadcast %cst_57 : f32 to vector<8x21xf32>
    %68 = arith.addf %67, %66 : vector<8x21xf32>
    %69 = math.log %68 : vector<8x21xf32>
    %70 = arith.select %63, %61, %69 : vector<8x21xi1>, vector<8x21xf32>
    %c0_58 = arith.constant 0 : index
    %c0_59 = arith.constant 0 : index
    %71 = vector.load %arg14[%c0_58, %c0_59] : memref<42x128xf32, #tpu.memory_space<vmem>>, vector<42x128xf32>
    %cst_60 = arith.constant dense<0.000000e+00> : vector<8x128xf32>
    %72 = tpu.matmul %57, %71, %cst_60 {dimension_numbers = #tpu.dot_dimension_numbers<[1], [0], [0], [1], [0, 0, 1, 1], [], []>} : vector<8x42xf32>, vector<42x128xf32>, vector<8x128xf32> -> vector<8x128xf32>
    %c0_61 = arith.constant 0 : index
    %c0_62 = arith.constant 0 : index
    %73 = vector.load %arg13[%c0_61, %c0_62] : memref<8x21xf32, #tpu.memory_space<vmem>>, vector<8x21xf32>
    %74 = arith.mulf %73, %70 : vector<8x21xf32>
    %c0_63 = arith.constant 0 : index
    %c0_64 = arith.constant 0 : index
    %75 = vector.load %arg15[%c0_63, %c0_64] : memref<21x128xf32, #tpu.memory_space<vmem>>, vector<21x128xf32>
    %cst_65 = arith.constant dense<0.000000e+00> : vector<8x128xf32>
    %76 = tpu.matmul %74, %75, %cst_65 {dimension_numbers = #tpu.dot_dimension_numbers<[1], [0], [0], [1], [0, 0, 1, 1], [], []>} : vector<8x21xf32>, vector<21x128xf32>, vector<8x128xf32> -> vector<8x128xf32>
    %77 = arith.addf %72, %76 : vector<8x128xf32>
    %c0_66 = arith.constant 0 : index
    %c0_67 = arith.constant 0 : index
    %78 = vector.load %arg16[%c0_66, %c0_67] : memref<1x128xf32, #tpu.memory_space<vmem>>, vector<1x128xf32>
    %79 = vector.broadcast %78 : vector<1x128xf32> to vector<8x128xf32>
    %80 = arith.addf %77, %79 : vector<8x128xf32>
    %c0_68 = arith.constant 0 : index
    %c0_69 = arith.constant 0 : index
    %81 = vector.load %arg17[%c0_68, %c0_69] : memref<8x128xf32, #tpu.memory_space<vmem>>, vector<8x128xf32>
    tpu.vector_store %arg17[%c0_68, %c0_69], %80 {strides = array<i32>} : memref<8x128xf32, #tpu.memory_space<vmem>>, vector<8x128xf32>,
    return
  }
  func.func @transform_0(%arg0: i32) -> (i32, i32) {
    %c0_i32 = arith.constant 0 : i32
    %c0_i32_0 = arith.constant 0 : i32
    %c0_i32_1 = arith.constant 0 : i32
    return %c0_i32, %c0_i32_0 : i32, i32
  }
  func.func @transform_1(%arg0: i32) -> (i32, i32) {
    %c0_i32 = arith.constant 0 : i32
    %c0_i32_0 = arith.constant 0 : i32
    %c0_i32_1 = arith.constant 0 : i32
    return %c0_i32, %c0_i32_0 : i32, i32
  }
  func.func @transform_2(%arg0: i32) -> (i32, i32) {
    %c0_i32 = arith.constant 0 : i32
    %c0_i32_0 = arith.constant 0 : i32
    %c0_i32_1 = arith.constant 0 : i32
    return %c0_i32, %c0_i32_0 : i32, i32
  }
  func.func @transform_3(%arg0: i32) -> (i32, i32) {
    %c0_i32 = arith.constant 0 : i32
    %c0_i32_0 = arith.constant 0 : i32
    %c0_i32_1 = arith.constant 0 : i32
    return %c0_i32, %c0_i32_0 : i32, i32
  }
  func.func @transform_4(%arg0: i32) -> (i32, i32) {
    %c0_i32 = arith.constant 0 : i32
    %c0_i32_0 = arith.constant 0 : i32
    %c0_i32_1 = arith.constant 0 : i32
    return %c0_i32, %c0_i32_0 : i32, i32
  }
  func.func @transform_5(%arg0: i32) -> (i32, i32) {
    %c0_i32 = arith.constant 0 : i32
    %c0_i32_0 = arith.constant 0 : i32
    %c0_i32_1 = arith.constant 0 : i32
    return %c0_i32, %c0_i32_0 : i32, i32
  }
  func.func @transform_6(%arg0: i32) -> (i32, i32) {
    %c0_i32 = arith.constant 0 : i32
    %c0_i32_0 = arith.constant 0 : i32
    %c0_i32_1 = arith.constant 0 : i32
    return %c0_i32, %c0_i32_0 : i32, i32
  }
  func.func @transform_7(%arg0: i32) -> (i32, i32, i32) {
    %c0_i32 = arith.constant 0 : i32
    %c0_i32_0 = arith.constant 0 : i32
    %c0_i32_1 = arith.constant 0 : i32
    %c0_i32_2 = arith.constant 0 : i32
    return %c0_i32, %c0_i32_0, %c0_i32_1 : i32, i32, i32
  }
  func.func @transform_8(%arg0: i32) -> (i32, i32, i32) {
    %c0_i32 = arith.constant 0 : i32
    %c0_i32_0 = arith.constant 0 : i32
    %c0_i32_1 = arith.constant 0 : i32
    %c0_i32_2 = arith.constant 0 : i32
    return %c0_i32, %c0_i32_0, %c0_i32_1 : i32, i32, i32
  }
  func.func @transform_9(%arg0: i32) -> (i32, i32, i32) {
    %c0_i32 = arith.constant 0 : i32
    %c0_i32_0 = arith.constant 0 : i32
    %c0_i32_1 = arith.constant 0 : i32
    %c0_i32_2 = arith.constant 0 : i32
    return %c0_i32, %c0_i32_0, %c0_i32_1 : i32, i32, i32
  }
  func.func @transform_10(%arg0: i32) -> (i32, i32, i32) {
    %c0_i32 = arith.constant 0 : i32
    %c0_i32_0 = arith.constant 0 : i32
    %c0_i32_1 = arith.constant 0 : i32
    %c0_i32_2 = arith.constant 0 : i32
    return %c0_i32, %c0_i32_0, %c0_i32_1 : i32, i32, i32
  }
  func.func @transform_11(%arg0: i32) -> (i32, i32) {
    %c0_i32 = arith.constant 0 : i32
    %c0_i32_0 = arith.constant 0 : i32
    %c0_i32_1 = arith.constant 0 : i32
    return %c0_i32, %c0_i32_0 : i32, i32
  }
  func.func @transform_12(%arg0: i32) -> (i32, i32) {
    %c0_i32 = arith.constant 0 : i32
    %c0_i32_0 = arith.constant 0 : i32
    %c0_i32_1 = arith.constant 0 : i32
    return %c0_i32, %c0_i32_0 : i32, i32
  }
  func.func @transform_13(%arg0: i32) -> (i32, i32) {
    %c0_i32 = arith.constant 0 : i32
    %c0_i32_0 = arith.constant 0 : i32
    %c0_i32_1 = arith.constant 0 : i32
    return %c0_i32, %c0_i32_0 : i32, i32
  }
  func.func @transform_14(%arg0: i32) -> (i32, i32) {
    %c0_i32 = arith.constant 0 : i32
    %c0_i32_0 = arith.constant 0 : i32
    %c0_i32_1 = arith.constant 0 : i32
    return %c0_i32, %c0_i32_0 : i32, i32
  }
  func.func @transform_15(%arg0: i32) -> (i32, i32) {
    %c0_i32 = arith.constant 0 : i32
    %c0_i32_0 = arith.constant 0 : i32
    %c0_i32_1 = arith.constant 0 : i32
    return %c0_i32, %c0_i32_0 : i32, i32
  }
  func.func @transform_16(%arg0: i32) -> (i32, i32) {
    %c0_i32 = arith.constant 0 : i32
    %c0_i32_0 = arith.constant 0 : i32
    %c0_i32_1 = arith.constant 0 : i32
    return %c0_i32, %c0_i32_0 : i32, i32
  }
}

</mosaic_0001>

<bundles_post_ra>
// kernel: freq_forward.1
= control target key start
LH: loop header
LB: loop body
LE: loop exit
PB: predicated region body
PF: predicated region fallthrough
CT: control target
= control target key end

     0   :  { %v1495_v0 = vmov 0.0|0.0   ;;  %vm1496_vm0 = vmmov 0   ;;  %v1497_v3 = vmov 0.0   ;;  %vm57_vm1 = vcmask 195584   ;;  %s1847_s1 = inlined_call_operand.vmem [shape: f32[24,3], index: 1, kind: input, shape index: {}]   ;;  %s1848_s0 = inlined_call_operand.vmem [shape: f32[8,24], index: 0, kind: input, shape index: {}]   ;;  %s1849_s2 = inlined_call_operand.vmem [shape: f32[3,24], index: 2, kind: input, shape index: {}]   ;;  %s1850_s4 = inlined_call_operand.vmem [shape: f32[3,24], index: 4, kind: input, shape index: {}]   ;;  %s1851_s3 = inlined_call_operand.vmem [shape: f32[24,24], index: 3, kind: input, shape index: {}]   ;;  %s1852_s5 = inlined_call_operand.vmem [shape: f32[24,42], index: 5, kind: input, shape index: {}]   ;;  %s1853_s7 = inlined_call_operand.vmem [shape: f32[2,42,42], index: 7, kind: input, shape index: {}]   ;;  %s1854_s9 = inlined_call_operand.vmem [shape: f32[2,42,42], index: 9, kind: input, shape index: {}]   ;;  %s1855_s6 = inlined_call_operand.vmem [shape: f32[8,42], index: 6, kind: input, shape index: {}]   ;;  %s1856_s8 = inlined_call_operand.vmem [shape: f32[2,1,42], index: 8, kind: input, shape index: {}]   ;;  %s1857_s10 = inlined_call_operand.vmem [shape: f32[2,1,42], index: 10, kind: input, shape index: {}]   ;;  %s1858_s11 = inlined_call_operand.vmem [shape: f32[42,21], index: 11, kind: input, shape index: {}]   ;;  %s1859_s14 = inlined_call_operand.vmem [shape: f32[21,128], index: 14, kind: input, shape index: {}]   ;;  %s1860_s13 = inlined_call_operand.vmem [shape: f32[42,128], index: 13, kind: input, shape index: {}]   ;;  %s1861_s12 = inlined_call_operand.vmem [shape: f32[8,21], index: 12, kind: input, shape index: {}]   ;;  %s1862_s15 = inlined_call_operand.vmem [shape: f32[1,128], index: 15, kind: input, shape index: {}]   ;;  %s1863_s16 = inlined_call_operand.vmem [shape: f32[8,128], index: 16, kind: output, shape index: {}]  }
   0x1   :  { %1865 = sst [smem:[#allocation2_spill]] %s1847_s1  ;;  %1410 = vmatprep.subr.bf16.mxu0 %v1495_v0  ;;  %1271 = vmatprep.mubr.msk.f32.mxu0 %vm1496_vm0, %v1497_v3  ;;  %v53_v6 = vld [vmem:[%s1848_s0] sm:$0xff]  ;;  %vm136_vm2 = vcmask 1042432   ;;  %vm132_vm3 = vcmask 23552   ;;  %v295_v20 = vld [vmem:[%s1851_s3 + $0x8] sm:$0xff]  ;;  %v296_v27 = vld [vmem:[%s1851_s3 + $0x10] sm:$0xff] }
   0x2   :  { %s1866_s23 = sld [smem:[#allocation2_spill]]  ;;  %1274 = vmatprep.subr.mxu1 %v1497_v3  ;;  %1276 = vmatprep.mubr.msk.f32.mxu1 %vm1496_vm0, %v1497_v3  ;;  %v131_v7 = vld [vmem:[%s1849_s2] sm:$0x7]  ;;  %v449_v29 = vld [vmem:[%s1852_s5 + $0x8] sm:$0xff]  ;;  %v450_v31 = vld [vmem:[%s1852_s5 + $0x10] sm:$0xff]  ;;  %vm542_vm6 = vcmask 1041408  }
   0x3   :  { %1275 = vmatpush3.msk.msra.mxu1 %vm136_vm2, %v131_v7  ;;  %v297_v14 = vld [vmem:[%s1850_s4] sm:$0x7]  ;;  %v526_v33 = vld [vmem:[%s1853_s7 + $0x8] sm:$0xff]  ;;  %v527_v34 = vld [vmem:[%s1853_s7 + $0x10] sm:$0xff]  ;;  %vm1498_vm7 = vmmov 1   ;;  %vm538_vm9 = vcmask 343040  }
   0x4   :  { %1413 = vmatprep.subr.bf16.mxu1 %v1495_v0  ;;  %v294_v19 = vld [vmem:[%s1851_s3] sm:$0xff]  ;;  %v528_v36 = vld [vmem:[%s1853_s7 + $0x18] sm:$0xff]  ;;  %v530_v45 = vld [vmem:[%s1853_s7 + $0x28] sm:$0x3]  ;;  %vm997_vm10 = vcmask 1044480   ;;  %vm993_vm12 = vcmask 171008  }
   0x5   :  { %v1417_v24 = vpack.c.bf16 %v295_v20, %v294_v19  ;;  %v448_v28 = vld [vmem:[%s1852_s5] sm:$0xff]  ;;  %v1426_v37 = vpack.c.bf16 %v528_v36, %v527_v34  ;;  %vm1676_vm8 = vmpackc.low %vm542_vm6, %vm1498_vm7  ;;  %v618_v49 = vld [vmem:[%s1854_s9 + $0x8] sm:$0xff] }
   0x6   :  { %v1420_v30 = vpack.c.bf16 %v449_v29, %v448_v28  ;;  %v525_v32 = vld [vmem:[%s1853_s7] sm:$0xff]  ;;  %v619_v50 = vld [vmem:[%s1854_s9 + $0x10] sm:$0xff]  ;;  %v620_v52 = vld [vmem:[%s1854_s9 + $0x18] sm:$0xff] }
   0x7   :  { %v1423_v35 = vpack.c.bf16 %v526_v33, %v525_v32  ;;  %v529_v44 = vld [vmem:[%s1853_s7 + $0x20] sm:$0xff]  ;;  %v1436_v53 = vpack.c.bf16 %v620_v52, %v619_v50  ;;  %v622_v59 = vld [vmem:[%s1854_s9 + $0x28] sm:$0x3]  ;;  %v1171_v61 = vld [vmem:[%s1853_s7 + $0x30] sm:$0xff] }
   0x8   :  { %v54_v1 = vld [vmem:[%s1866_s23] sm:$0xff]  ;;  %v55_v2 = vld [vmem:[%s1866_s23 + $0x8] sm:$0xff]  ;;  %v56_v5 = vld [vmem:[%s1866_s23 + $0x10] sm:$0xff]  ;;  %v1429_v46 = vpack.c.bf16 %v530_v45, %v529_v44 }
   0x9   :  { %v1411_v4 = vpack.c.bf16 %v55_v2, %v54_v1  ;;  %v617_v48 = vld [vmem:[%s1854_s9] sm:$0xff]  ;;  %v1172_v62 = vld [vmem:[%s1853_s7 + $0x38] sm:$0xff]  ;;  %v1174_v2 = vld [vmem:[%s1853_s7 + $0x48] sm:$0xff] }
   0xa   :  { %v1433_v51 = vpack.c.bf16 %v618_v49, %v617_v48  ;;  %v451_v54 = vld [vmem:[%s1855_s6] sm:$0xff]  ;;  %v1443_v1 = vpack.c.bf16 %v1172_v62, %v1171_v61  ;;  %v892_v28 = vld [vmem:[%s1858_s11 + $0x8] sm:$0xff]  ;;  %v893_v29 = vld [vmem:[%s1858_s11 + $0x10] sm:$0xff] }
   0xb   :  { %1412 = vmatpush3.bf16.msra.mxu0 %v1411_v4  ;;  %v621_v58 = vld [vmem:[%s1854_s9 + $0x20] sm:$0xff]  ;;  %v991_v48 = vld [vmem:[%s1859_s14 + $0x8] sm:$0xff]  ;;  %v992_v50 = vld [vmem:[%s1859_s14 + $0x10] sm:$0x1f] }
   0xc   :  { %1269 = vmatprep.subr.mxu0 %v1497_v3  ;;  %v1439_v60 = vpack.c.bf16 %v622_v59, %v621_v58  ;;  %v1173_v63 = vld [vmem:[%s1853_s7 + $0x40] sm:$0xff] }
   0xd   :  { %v1168_v19 = vld [vmem:[%s1857_s10] ss:$0 sm:$0xff]  ;;  %v1178_v33 = vld [vmem:[%s1856_s8 + $0x1] ss:$0 sm:$0xff] }
   0xe   :  { %v982_v59 = vld [vmem:[%s1860_s13] sm:$0xff] }
   0xf   :  { %1270 = vmatpush3.msra.mxu0 %v56_v5  ;;  %v988_v62 = vld [vmem:[%s1861_s12] sm:$0xff] }
  0x10   :  { %1272 = vmatmul.mubr.msk.f32.vlgmr.msra.gmra.mrb[0].mxu0 %vm57_vm1, %v53_v6  ;;  %1419 = vmatprep.subr.bf16.mxu0 %v1495_v0 }
  0x11   :  { %1308 = vmatprep.mubr.msk.f32.mxu0 %vm1496_vm0, %v1497_v3  ;;  %1421 = vmatpush3.bf16.msra.mxu0 %v1420_v30 }
  0x12   :  { %1306 = vmatprep.subr.mxu0 %v1497_v3 }
  0x15   :  { %1307 = vmatpush3.msra.mxu0 %v450_v31  ;;  %v894_v31 = vld [vmem:[%s1858_s11 + $0x18] sm:$0xff] }
  0x16   :  { %1432 = vmatprep.subr.bf16.mxu0 %v1495_v0  ;;  %v1466_v32 = vpack.c.bf16 %v894_v31, %v893_v29 }
  0xe3   :  { %v127_v8 = vpop.f32.mrb[0].mxu0 }
  0xe4   :  { %v1273_v9 = vpop.f32.mrb[1].mxu0  ;;  %1277 = vmatmul.mubr.msk.f32.vlgmr.msra.gmra.mrb[0].mxu1 %vm132_vm3, %v127_v8 }
  0xe5   :  { %1415 = vmatpush3.bf16.msra.mxu1 %v1411_v4  ;;  %1285 = vmatprep.mubr.msk.f32.mxu1 %vm1496_vm0, %v1497_v3  ;;  %v1446_v4 = vpack.c.bf16 %v1174_v2, %v1173_v63 }
  0xe6   :  { %1283 = vmatprep.subr.mxu1 %v1497_v3 }
  0xe9   :  { %1284 = vmatpush3.msra.mxu1 %v56_v5  ;;  %v1165_v5 = vld [vmem:[%s1856_s8] ss:$0 sm:$0xff] }
  0xea   :  { %1288 = vmatprep.subr.mxu1 %v1497_v3 }
 0x1b7   :  { %v206_v10 = vpop.f32.mrb[0].mxu1 }
 0x1b8   :  { %v210_v11 = vsub.f32 %v53_v6, %v206_v10  ;;  %v1278_v12 = vpop.f32.mrb[1].mxu1 }
 0x1ba   :  { %v211_v13 = vmul.f32 %v210_v11, %v210_v11 }
 0x1bc   :  { %1286 = vmatmul.mubr.msk.f32.vlgmr.msra.gmra.mrb[2].mxu1 %vm57_vm1, %v211_v13  ;;  %v1181_v13 = vld [vmem:[%s1854_s9 + $0x30] sm:$0xff] }
 0x1bd   :  { %1290 = vmatprep.mubr.msk.f32.mxu1 %vm1496_vm0, %v1497_v3  ;;  %1289 = vmatpush3.msk.msra.mxu1 %vm136_vm2, %v297_v14  ;;  %v1182_v14 = vld [vmem:[%s1854_s9 + $0x38] sm:$0xff] }
 0x1be   :  { %1416 = vmatprep.subr.bf16.mxu1 %v1495_v0 }
 0x28f   :  { %v281_v15 = vpop.f32.mrb[2].mxu1 }
 0x290   :  { %v285_v16 = vmul.f32 1.1428572, %v281_v15  ;;  %v1287_v17 = vpop.f32.mrb[3].mxu1  ;;  %v1183_v15 = vld [vmem:[%s1854_s9 + $0x40] sm:$0xff] }
 0x291   :  { %v1184_v17 = vld [vmem:[%s1854_s9 + $0x48] sm:$0xff] }
 0x292   :  { %v286_v18 = vadd.f32 1e-05, %v285_v16  ;;  %v1453_v16 = vpack.c.bf16 %v1182_v14, %v1181_v13 }
 0x294   :  { %1489 = vrsqrt.f32 %v286_v18  ;;  %vm289_vm4 = vcmp.eq.f32.partialorder %v286_v18, inf  ;;  %v292_v23 = vand.u32 2147483648, %v286_v18  ;;  %vm291_vm5 = vcmp.eq.f32.partialorder %v286_v18, 0.0 }
 0x29e   :  { %v1490_v21 = vpop.eup %1489 }
 0x29f   :  { %v288_v22 = vmul.f32 %v1490_v21, %v286_v18 }
 0x2a1   :  { %v290_v25 = vsel %vm289_vm4, %v286_v18, %v288_v22  ;;  %v1456_v18 = vpack.c.bf16 %v1184_v17, %v1183_v15 }
 0x2a2   :  { %v293_v26 = vsel %vm291_vm5, %v292_v23, %v290_v25  ;;  %v1186_v25 = vld [vmem:[%s1854_s9 + $0x58] sm:$0x3] }
 0x2a3   :  { %1291 = vmatmul.mubr.msk.f32.vlgmr.msra.gmra.mrb[4].mxu1 %vm132_vm3, %v293_v26 }
 0x2a4   :  { %1418 = vmatpush3.bf16.msra.mxu1 %v1417_v24  ;;  %1299 = vmatprep.mubr.msk.f32.mxu1 %vm1496_vm0, %v1497_v3  ;;  %v1185_v24 = vld [vmem:[%s1854_s9 + $0x50] sm:$0xff] }
 0x2a5   :  { %1297 = vmatprep.subr.mxu1 %v1497_v3  ;;  %v1459_v26 = vpack.c.bf16 %v1186_v25, %v1185_v24 }
 0x2a8   :  { %1298 = vmatpush3.msra.mxu1 %v296_v27  ;;  %v891_v27 = vld [vmem:[%s1858_s11] sm:$0xff] }
 0x2a9   :  { %1300 = vmatmul.mubr.msk.f32.vlgmr.msra.gmra.mrb[6].mxu1 %vm57_vm1, %v210_v11  ;;  %1422 = vmatprep.subr.bf16.mxu1 %v1495_v0  ;;  %v1176_v11 = vld [vmem:[%s1853_s7 + $0x58] sm:$0x3]  ;;  %v1463_v30 = vpack.c.bf16 %v892_v28, %v891_v27 }
 0x2aa   :  { %1323 = vmatprep.mubr.msk.f32.mxu1 %vm1496_vm0, %v1497_v3  ;;  %1424 = vmatpush3.bf16.msra.mxu1 %v1423_v35 }
 0x2ab   :  { %1425 = vmatprep.subr.bf16.mxu1 %v1495_v0 }
 0x2ae   :  { %1427 = vmatpush3.bf16.msra.mxu1 %v1426_v37 }
 0x2af   :  { %1428 = vmatprep.subr.bf16.mxu1 %v1495_v0 }
 0x2b2   :  { %1431 = vmatpush3.bf16.msk.msra.mxu1 %vm1676_vm8, %v1429_v46  ;;  %v990_v46 = vld [vmem:[%s1859_s14] sm:$0xff] }
 0x2b3   :  { %1442 = vmatprep.subr.bf16.mxu1 %v1495_v0  ;;  %v1473_v49 = vpack.c.bf16 %v991_v48, %v990_v46 }
 0x376   :  { %v370_v38 = vpop.f32.mrb[4].mxu1 }
 0x377   :  { %v1292_v39 = vpop.f32.mrb[5].mxu1 }
 0x378   :  { %v896_v39 = vld [vmem:[%s1858_s11 + $0x28] sm:$0x3] }
 0x37c   :  { %v443_v40 = vpop.f32.mrb[6].mxu1 }
 0x37d   :  { %v444_v41 = vadd.f32 %v443_v40, %v370_v38  ;;  %v1301_v42 = vpop.f32.mrb[7].mxu1  ;;  %v895_v38 = vld [vmem:[%s1858_s11 + $0x20] sm:$0xff] }
 0x37e   :  { %v1469_v40 = vpack.c.bf16 %v896_v39, %v895_v38 }
 0x37f   :  { %v447_v43 = vadd.f32 %v444_v41, %v206_v10  ;;  %v1175_v10 = vld [vmem:[%s1853_s7 + $0x50] sm:$0xff]  ;;  %v1188_v41 = vld [vmem:[%s1857_s10 + $0x1] ss:$0 sm:$0xff] }
 0x380   :  { %v1449_v12 = vpack.c.bf16 %v1176_v11, %v1175_v10 }
 0x381   :  { %1309 = vmatmul.mubr.msk.f32.vlgmr.msra.gmra.mrb[2].mxu0 %vm57_vm1, %v447_v43 }
 0x382   :  { %1338 = vmatprep.mubr.msk.f32.mxu0 %vm1496_vm0, %v1497_v3  ;;  %1434 = vmatpush3.bf16.msra.mxu0 %v1433_v51 }
 0x383   :  { %1435 = vmatprep.subr.bf16.mxu0 %v1495_v0 }
 0x386   :  { %1437 = vmatpush3.bf16.msra.mxu0 %v1436_v53 }
 0x387   :  { %1438 = vmatprep.subr.bf16.mxu0 %v1495_v0 }
 0x38a   :  { %1441 = vmatpush3.bf16.msk.msra.mxu0 %vm1676_vm8, %v1439_v60  ;;  %v983_v60 = vld [vmem:[%s1860_s13 + $0x8] sm:$0xff] }
 0x38b   :  { %1452 = vmatprep.subr.bf16.mxu0 %v1495_v0 }
 0x454   :  { %v521_v55 = vpop.f32.mrb[2].mxu0 }
 0x455   :  { %v522_v56 = vadd.f32 %v521_v55, %v451_v54  ;;  %v1310_v57 = vpop.f32.mrb[3].mxu0 }
 0x457   :  { %1324 = vmatmul.mubr.msk.f32.vlgmr.msra.gmra.mrb[8].mxu1 %vm538_vm9, %v522_v56 }
 0x458   :  { %1353 = vmatprep.mubr.msk.f32.mxu1 %vm1496_vm0, %v1497_v3  ;;  %1444 = vmatpush3.bf16.msra.mxu1 %v1443_v1  ;;  %v1476_v1 = vpack.c.bf16 %v983_v60, %v982_v59 }
 0x459   :  { %1445 = vmatprep.subr.bf16.mxu1 %v1495_v0 }
 0x45c   :  { %1447 = vmatpush3.bf16.msra.mxu1 %v1446_v4  ;;  %v984_v4 = vld [vmem:[%s1860_s13 + $0x10] sm:$0xff] }
 0x45d   :  { %1448 = vmatprep.subr.bf16.mxu1 %v1495_v0 }
 0x460   :  { %1451 = vmatpush3.bf16.msk.msra.mxu1 %vm1676_vm8, %v1449_v12  ;;  %v1198_v12 = vld [vmem:[%s1862_s15] ss:$0 sm:$0xff] }
 0x461   :  { %1462 = vmatprep.subr.bf16.mxu1 %v1495_v0 }
 0x52a   :  { %v612_v6 = vpop.f32.mrb[8].mxu1 }
 0x52b   :  { %v613_v7 = vadd.f32 %v1165_v5, %v612_v6  ;;  %v1325_v8 = vpop.f32.mrb[9].mxu1  ;;  %v985_v5 = vld [vmem:[%s1860_s13 + $0x18] sm:$0xff] }
 0x52c   :  { %v1479_v6 = vpack.c.bf16 %v985_v5, %v984_v4  ;;  %v987_v8 = vld [vmem:[%s1860_s13 + $0x28] sm:$0x3] }
 0x52d   :  { %v616_v9 = vmax.f32 %v613_v7, 0.0  ;;  %v986_v7 = vld [vmem:[%s1860_s13 + $0x20] sm:$0xff] }
 0x52f   :  { %1339 = vmatmul.mubr.msk.f32.vlgmr.msra.gmra.mrb[4].mxu0 %vm538_vm9, %v616_v9  ;;  %v1482_v9 = vpack.c.bf16 %v987_v8, %v986_v7 }
 0x530   :  { %1368 = vmatprep.mubr.msk.f32.mxu0 %vm1496_vm0, %v1497_v3  ;;  %1454 = vmatpush3.bf16.msra.mxu0 %v1453_v16 }
 0x531   :  { %1455 = vmatprep.subr.bf16.mxu0 %v1495_v0 }
 0x534   :  { %1457 = vmatpush3.bf16.msra.mxu0 %v1456_v18 }
 0x535   :  { %1458 = vmatprep.subr.bf16.mxu0 %v1495_v0 }
 0x538   :  { %1461 = vmatpush3.bf16.msk.msra.mxu0 %vm1676_vm8, %v1459_v26 }
 0x539   :  { %1472 = vmatprep.subr.bf16.mxu0 %v1495_v0 }
 0x602   :  { %v702_v20 = vpop.f32.mrb[4].mxu0 }
 0x603   :  { %v703_v21 = vadd.f32 %v1168_v19, %v702_v20  ;;  %v1340_v22 = vpop.f32.mrb[5].mxu0 }
 0x605   :  { %v706_v23 = vadd.f32 %v703_v21, %v522_v56 }
 0x607   :  { %1354 = vmatmul.mubr.msk.f32.vlgmr.msra.gmra.mrb[10].mxu1 %vm538_vm9, %v706_v23 }
 0x608   :  { %1383 = vmatprep.mubr.msk.f32.mxu1 %vm1496_vm0, %v1497_v3  ;;  %1464 = vmatpush3.bf16.msra.mxu1 %v1463_v30 }
 0x609   :  { %1465 = vmatprep.subr.bf16.mxu1 %v1495_v0 }
 0x60c   :  { %1467 = vmatpush3.bf16.msra.mxu1 %v1466_v32 }
 0x60d   :  { %1468 = vmatprep.subr.bf16.mxu1 %v1495_v0 }
 0x610   :  { %1471 = vmatpush3.bf16.msk.msra.mxu1 %vm1676_vm8, %v1469_v40 }
 0x6da   :  { %v794_v34 = vpop.f32.mrb[10].mxu1 }
 0x6db   :  { %v795_v35 = vadd.f32 %v1178_v33, %v794_v34  ;;  %v1355_v36 = vpop.f32.mrb[11].mxu1 }
 0x6dd   :  { %v798_v37 = vmax.f32 %v795_v35, 0.0 }
 0x6df   :  { %1369 = vmatmul.mubr.msk.f32.vlgmr.msra.gmra.mrb[6].mxu0 %vm538_vm9, %v798_v37 }
 0x6e0   :  { %1392 = vmatprep.mubr.msk.f32.mxu0 %vm1496_vm0, %v1497_v3  ;;  %1474 = vmatpush3.bf16.msra.mxu0 %v1473_v49 }
 0x6e1   :  { %1390 = vmatprep.subr.mxu0 %v1497_v3 }
 0x6e4   :  { %1391 = vmatpush3.msk.msra.mxu0 %vm997_vm10, %v992_v50 }
 0x6e5   :  { %1475 = vmatprep.subr.bf16.mxu0 %v1495_v0 }
 0x7b2   :  { %v886_v42 = vpop.f32.mrb[6].mxu0 }
 0x7b3   :  { %v887_v43 = vadd.f32 %v1188_v41, %v886_v42  ;;  %v1370_v44 = vpop.f32.mrb[7].mxu0 }
 0x7b5   :  { %v890_v45 = vadd.f32 %v887_v43, %v706_v23 }
 0x7b7   :  { %1384 = vmatmul.mubr.msk.f32.vlgmr.msra.gmra.mrb[12].mxu1 %vm538_vm9, %v890_v45 }
 0x88a   :  { %v969_v51 = vpop.f32.mrb[12].mxu1 }
 0x88b   :  { %v1193_v52 = vadd.f32 -5.0, %v969_v51  ;;  %v1385_v53 = vpop.f32.mrb[13].mxu1 }
 0x88d   :  { %v975_v54 = vmin.f32 %v1193_v52, 20.0  ;;  %vm974_vm11 = vcmp.gt.f32.partialorder %v1193_v52, 20.0 }
 0x88f   :  { %v976_v55 = vmul.f32 1.442695, %v975_v54 }
 0x891   :  { %1491 = vpow2.f32 %v976_v55 }
 0x89b   :  { %v1492_v56 = vpop.eup %1491 }
 0x89c   :  { %v978_v57 = vadd.f32 1.0, %v1492_v56 }
 0x89e   :  { %1493 = vlog2.f32 %v978_v57 }
 0x8a8   :  { %v1494_v58 = vpop.eup %1493 }
 0x8a9   :  { %v980_v61 = vmul.f32 0.6931472, %v1494_v58 }
 0x8ab   :  { %v981_v63 = vsel %vm974_vm11, %v1193_v52, %v980_v61 }
 0x8ac   :  { %v989_v2 = vmul.f32 %v988_v62, %v981_v63 }
 0x8ae   :  { %1393 = vmatmul.mubr.msk.f32.vlgmr.msra.gmra.mrb[8].mxu0 %vm993_vm12, %v989_v2 }
 0x8af   :  { %1477 = vmatpush3.bf16.msra.mxu0 %v1476_v1  ;;  %1407 = vmatprep.mubr.msk.f32.mxu0 %vm1496_vm0, %v1497_v3 }
 0x8b0   :  { %1478 = vmatprep.subr.bf16.mxu0 %v1495_v0 }
 0x8b3   :  { %1480 = vmatpush3.bf16.msra.mxu0 %v1479_v6 }
 0x8b4   :  { %1481 = vmatprep.subr.bf16.mxu0 %v1495_v0 }
 0x8b7   :  { %1484 = vmatpush3.bf16.msk.msra.mxu0 %vm1676_vm8, %v1482_v9 }
 0x8ba   :  { %1408 = vmatmul.mubr.msk.f32.vlgmr.msra.gmra.mrb[10].mxu0 %vm538_vm9, %v890_v45 }
 0x981   :  { %v1067_v3 = vpop.f32.mrb[8].mxu0 }
 0x982   :  { %v1394_v10 = vpop.f32.mrb[9].mxu0 }
 0x98d   :  { %v1140_v11 = vpop.f32.mrb[10].mxu0 }
 0x98e   :  { %v1141_v13 = vadd.f32 %v1140_v11, %v1067_v3  ;;  %v1409_v14 = vpop.f32.mrb[11].mxu0 }
 0x990   :  { %v1151_v15 = vadd.f32 %v1198_v12, %v1141_v13 }
 0x992   :  { %1152 = vst [vmem:[%s1863_s16] sm:$0xff] %v1151_v15 }

</bundles_post_ra>
